<compile_context>
chip_gen: v7x
topology: tpu7x:2x2x1
jax: 0.10.0
libtpu: 0.0.40
codegen_flags: <defaults>
</compile_context>

<pallas_src>
import functools

import jax
import jax.numpy as jnp
from jax.experimental import pallas as pl
from jax.experimental.pallas import tpu as pltpu


MAX_ROW_TILE = 256  # one full MXU pass on v6e/v7x; two on v5e's 128-wide MXU.


def _round_up(n, m):
    return ((n + m - 1) // m) * m


def projection_kernel(x_ref, w1_ref, b1_ref, w2_ref, b2_ref, o_ref):
    # x_ref:  (tm, input_dim)           f32  (cast to bf16 in-kernel)
    # w1_ref: (input_dim, hidden_dim)   bf16   b1_ref: (1, hidden_dim)  f32
    # w2_ref: (hidden_dim, output_dim)  bf16   b2_ref: (1, output_dim)  f32
    # o_ref:  (tm, output_dim)          out_dtype

    # First linear: bf16 operands, f32 accumulation on the MXU.
    x_bf = x_ref[...].astype(jnp.bfloat16)
    h = jnp.dot(x_bf, w1_ref[...], preferred_element_type=jnp.float32)
    h = jnp.maximum(h + b1_ref[...], 0.0)          # bias + ReLU in f32 (VPU)

    # Second linear: cast activations back to bf16 for the MXU, accumulate f32.
    z = jnp.dot(h.astype(jnp.bfloat16), w2_ref[...],
                preferred_element_type=jnp.float32)
    z = z + b2_ref[...]

    # F.normalize(z, dim=1) == z / max(||z||_2, 1e-12)
    #                       == z * rsqrt(max(||z||^2, 1e-24))
    sq = jnp.sum(z * z, axis=1, keepdims=True)     # cross-lane reduce (XLU)
    inv = jax.lax.rsqrt(jnp.maximum(sq, 1e-24))    # EUP rsqrt, VPU multiply
    o_ref[...] = (z * inv).astype(o_ref.dtype)


def prepare_params(w1, b1, w2, b2):
    """One-time conversion of PyTorch-layout Linear params.

    w1: (hidden_dim, input_dim), w2: (output_dim, hidden_dim), b1/b2 1-D.
    Returns MXU-ready (in, out)-layout bf16 weights and (1, dim) f32 biases.
    Call ONCE at setup (outside the per-step jit) so no per-call cast traffic.
    """
    hidden_dim = w1.shape[0]
    output_dim = w2.shape[0]
    return (jnp.asarray(w1).T.astype(jnp.bfloat16),
            jnp.asarray(b1).reshape(1, hidden_dim).astype(jnp.float32),
            jnp.asarray(w2).T.astype(jnp.bfloat16),
            jnp.asarray(b2).reshape(1, output_dim).astype(jnp.float32))


def _pick_tm(B):
    """Row tile choice.

    Prefer a divisor of B (multiple of 8, <= MAX_ROW_TILE) so no HBM padding
    copy is needed, and prefer >= 2 grid programs so the 'parallel' row axis
    can be sharded across v7x's two TensorCores.  Returns (tm, needs_pad).
    """
    if B % 8 == 0:
        divisors = [t for t in range(8, min(MAX_ROW_TILE, B) + 1, 8)
                    if B % t == 0]
        if divisors:
            multi = [t for t in divisors if B // t >= 2]
            return (max(multi) if multi else max(divisors)), False
    # Ragged batch: fall back to padding, still aiming for >= 2 programs.
    tm = min(MAX_ROW_TILE, max(8, _round_up(pl.cdiv(B, 2), 8)))
    return tm, True


def _vmem_budget_bytes(tm, input_dim, hidden_dim, output_dim):
    w1 = input_dim * hidden_dim * 2          # bf16, single-buffered
    w2 = hidden_dim * output_dim * 2
    biases = (hidden_dim + output_dim) * 4
    x_tiles = 2 * tm * input_dim * 4          # f32 x tile, double-buffered
    out_tiles = 2 * tm * output_dim * 4       # out tile, double-buffered
    h_tmp = tm * hidden_dim * (4 + 2)         # f32 h + bf16 recast
    z_tmp = 2 * tm * output_dim * 4
    est = w1 + w2 + biases + x_tiles + out_tiles + h_tmp + z_tmp
    # Raise above v5e's 16 MiB default; stay <= v7x's 64 MiB physical VMEM.
    return int(min(max(int(1.5 * est), 32 << 20), 64 << 20))


@functools.partial(jax.jit, static_argnames=("out_dtype",))
def projection_forward(x, w1_bf, b1_f, w2_bf, b2_f, *, out_dtype=jnp.float32):
    """x: (B, C, H, W) f32.  Params from `prepare_params`.

    Returns (B, output_dim) rows, L2-normalized along dim=1, dtype out_dtype.
    """
    B = x.shape[0]
    x_flat = x.reshape(B, -1)                  # torch Flatten (row-major NCHW)
    input_dim = x_flat.shape[1]
    hidden_dim = w1_bf.shape[1]
    output_dim = w2_bf.shape[1]

    tm, needs_pad = _pick_tm(B)
    B_run = _round_up(B, tm)
    if needs_pad and B_run != B:
        # Fallback only (ragged batch): padded rows are garbage and sliced off.
        x_flat = jnp.pad(x_flat, ((0, B_run - B), (0, 0)))

    grid = (B_run // tm,)
    # Weights/biases have constant index maps -> single-buffer so they are not
    # duplicated in VMEM by the default double-buffering.
    resident = dict(pipeline_mode=pl.Buffered(1))

    out = pl.pallas_call(
        projection_kernel,
        out_shape=jax.ShapeDtypeStruct((B_run, output_dim), out_dtype),
        grid_spec=pltpu.PrefetchScalarGridSpec(
            num_scalar_prefetch=0,
            grid=grid,
            in_specs=[
                pl.BlockSpec((tm, input_dim), lambda i: (i, 0)),                        # x tile (f32)
                pl.BlockSpec((input_dim, hidden_dim), lambda i: (0, 0), **resident),    # W1^T bf16
                pl.BlockSpec((1, hidden_dim), lambda i: (0, 0), **resident),            # b1 f32
                pl.BlockSpec((hidden_dim, output_dim), lambda i: (0, 0), **resident),   # W2^T bf16
                pl.BlockSpec((1, output_dim), lambda i: (0, 0), **resident),            # b2 f32
            ],
            out_specs=pl.BlockSpec((tm, output_dim), lambda i: (i, 0)),
        ),
        compiler_params=pltpu.CompilerParams(
            dimension_semantics=("parallel",),
            vmem_limit_bytes=_vmem_budget_bytes(
                tm, input_dim, hidden_dim, output_dim),
        ),
    )(x_flat, w1_bf, b1_f, w2_bf, b2_f)

    return out[:B] if B_run != B else out


if __name__ == "__main__":
    # Small, consistent shapes: NCHW input (16, 4, 8, 8) -> input_dim = 256.
    B, C, H, W = 16, 4, 8, 8
    input_dim = C * H * W        # 256
    hidden_dim = 256
    output_dim = 128

    key = jax.random.PRNGKey(0)
    kx, kw1, kb1, kw2, kb2 = jax.random.split(key, 5)

    x = jax.random.normal(kx, (B, C, H, W), dtype=jnp.float32)

    # Deterministic parameter init (PyTorch Linear-style uniform bounds).
    bound1 = 1.0 / (input_dim ** 0.5)
    w1 = jax.random.uniform(kw1, (hidden_dim, input_dim), jnp.float32, -bound1, bound1)
    b1 = jax.random.uniform(kb1, (hidden_dim,), jnp.float32, -bound1, bound1)
    bound2 = 1.0 / (hidden_dim ** 0.5)
    w2 = jax.random.uniform(kw2, (output_dim, hidden_dim), jnp.float32, -bound2, bound2)
    b2 = jax.random.uniform(kb2, (output_dim,), jnp.float32, -bound2, bound2)

    # One-time param prep (bf16 weights, (1, dim) f32 biases) outside the jit.
    params = prepare_params(w1, b1, w2, b2)

    out = projection_forward(x, *params)
    out = jax.block_until_ready(out)
    assert out.shape == (B, output_dim)
    assert out.dtype == jnp.float32

    xf = x.reshape(B, -1)

    # (1) Tight check vs. a JAX reference mirroring the kernel's bf16 matmul
    #     operands and f32 accumulation (verifies kernel correctness).
    h_m = jnp.maximum(
        jnp.dot(xf.astype(jnp.bfloat16), w1.T.astype(jnp.bfloat16),
                preferred_element_type=jnp.float32) + b1, 0.0)
    z_m = jnp.dot(h_m.astype(jnp.bfloat16), w2.T.astype(jnp.bfloat16),
                  preferred_element_type=jnp.float32) + b2
    ref_m = z_m * jax.lax.rsqrt(
        jnp.maximum(jnp.sum(z_m * z_m, axis=1, keepdims=True), 1e-24))
    assert jnp.allclose(out, ref_m, atol=1e-4, rtol=1e-4), \
        "mismatch vs bf16-mirrored reference"

    # (2) Loose check vs. the exact f32 (PyTorch-equivalent) reference —
    #     differences are only bf16 rounding of x / weights in the matmuls.
    h_f = jnp.maximum(xf @ w1.T + b1, 0.0)
    z_f = h_f @ w2.T + b2
    ref_f = z_f / jnp.maximum(
        jnp.sqrt(jnp.sum(z_f * z_f, axis=1, keepdims=True)), 1e-12)
    assert jnp.allclose(out, ref_f, atol=3e-2, rtol=3e-2), \
        "mismatch vs f32 reference"

    print("KERNEL_OK")
</pallas_src>

<mosaic_0001>
module attributes {stable_mosaic.version = 11 : i64} {
  func.func @projection_kernel(%arg0: i32, %arg1: memref<8x256xf32, #tpu.memory_space<vmem>>, %arg2: memref<256x256xbf16, #tpu.memory_space<vmem>>, %arg3: memref<1x256xf32, #tpu.memory_space<vmem>>, %arg4: memref<256x128xbf16, #tpu.memory_space<vmem>>, %arg5: memref<1x128xf32, #tpu.memory_space<vmem>>, %arg6: memref<8x128xf32, #tpu.memory_space<vmem>>) attributes {dimension_semantics = [#tpu.dimension_semantics<parallel>], iteration_bounds = array<i64: 2>, scalar_prefetch = 0 : i64, scratch_operands = 0 : i64, tpu.core_type = #tpu.core_type<tc>, window_params = [{transform_indices = @transform_0, window_bounds = array<i64: 8, 256>}, {pipeline_mode = #tpu.pipeline_mode<synchronous>, transform_indices = @transform_1, window_bounds = array<i64: 256, 256>}, {pipeline_mode = #tpu.pipeline_mode<synchronous>, transform_indices = @transform_2, window_bounds = array<i64: 1, 256>}, {pipeline_mode = #tpu.pipeline_mode<synchronous>, transform_indices = @transform_3, window_bounds = array<i64: 256, 128>}, {pipeline_mode = #tpu.pipeline_mode<synchronous>, transform_indices = @transform_4, window_bounds = array<i64: 1, 128>}, {transform_indices = @transform_5, window_bounds = array<i64: 8, 128>}]} {
    %c0 = arith.constant 0 : index
    %c0_0 = arith.constant 0 : index
    %0 = vector.load %arg1[%c0, %c0_0] : memref<8x256xf32, #tpu.memory_space<vmem>>, vector<8x256xf32>
    %1 = arith.truncf %0 : vector<8x256xf32> to vector<8x256xbf16>
    %c0_1 = arith.constant 0 : index
    %c0_2 = arith.constant 0 : index
    %2 = vector.load %arg2[%c0_1, %c0_2] : memref<256x256xbf16, #tpu.memory_space<vmem>>, vector<256x256xbf16>
    %cst = arith.constant dense<0.000000e+00> : vector<8x256xf32>
    %3 = tpu.matmul %1, %2, %cst {dimension_numbers = #tpu.dot_dimension_numbers<[1], [0], [0], [1], [0, 0, 1, 1], [], []>} : vector<8x256xbf16>, vector<256x256xbf16>, vector<8x256xf32> -> vector<8x256xf32>
    %c0_3 = arith.constant 0 : index
    %c0_4 = arith.constant 0 : index
    %4 = vector.load %arg3[%c0_3, %c0_4] : memref<1x256xf32, #tpu.memory_space<vmem>>, vector<1x256xf32>
    %5 = vector.broadcast %4 : vector<1x256xf32> to vector<8x256xf32>
    %6 = arith.addf %3, %5 : vector<8x256xf32>
    %cst_5 = arith.constant 0.000000e+00 : f32
    %7 = vector.broadcast %cst_5 : f32 to vector<8x256xf32>
    %8 = arith.maximumf %6, %7 : vector<8x256xf32>
    %9 = arith.truncf %8 : vector<8x256xf32> to vector<8x256xbf16>
    %c0_6 = arith.constant 0 : index
    %c0_7 = arith.constant 0 : index
    %10 = vector.load %arg4[%c0_6, %c0_7] : memref<256x128xbf16, #tpu.memory_space<vmem>>, vector<256x128xbf16>
    %cst_8 = arith.constant dense<0.000000e+00> : vector<8x128xf32>
    %11 = tpu.matmul %9, %10, %cst_8 {dimension_numbers = #tpu.dot_dimension_numbers<[1], [0], [0], [1], [0, 0, 1, 1], [], []>} : vector<8x256xbf16>, vector<256x128xbf16>, vector<8x128xf32> -> vector<8x128xf32>
    %c0_9 = arith.constant 0 : index
    %c0_10 = arith.constant 0 : index
    %12 = vector.load %arg5[%c0_9, %c0_10] : memref<1x128xf32, #tpu.memory_space<vmem>>, vector<1x128xf32>
    %13 = vector.broadcast %12 : vector<1x128xf32> to vector<8x128xf32>
    %14 = arith.addf %11, %13 : vector<8x128xf32>
    %15 = arith.mulf %14, %14 : vector<8x128xf32>
    %cst_11 = arith.constant dense<0.000000e+00> : vector<8xf32>
    %16 = vector.multi_reduction <add>, %15, %cst_11 [1] : vector<8x128xf32> to vector<8xf32>
    %17 = vector.shape_cast %16 : vector<8xf32> to vector<8x1xf32>
    %cst_12 = arith.constant 1.000000e-24 : f32
    %18 = vector.broadcast %cst_12 : f32 to vector<8x1xf32>
    %19 = arith.maximumf %17, %18 : vector<8x1xf32>
    %20 = math.rsqrt %19 : vector<8x1xf32>
    %21 = vector.broadcast %20 : vector<8x1xf32> to vector<8x128xf32>
    %22 = arith.mulf %14, %21 : vector<8x128xf32>
    %c0_13 = arith.constant 0 : index
    %c0_14 = arith.constant 0 : index
    %23 = vector.load %arg6[%c0_13, %c0_14] : memref<8x128xf32, #tpu.memory_space<vmem>>, vector<8x128xf32>
    tpu.vector_store %arg6[%c0_13, %c0_14], %22 {strides = array<i32>} : memref<8x128xf32, #tpu.memory_space<vmem>>, vector<8x128xf32>,
    return
  }
  func.func @transform_0(%arg0: i32) -> (i32, i32) {
    %c0_i32 = arith.constant 0 : i32
    %c0_i32_0 = arith.constant 0 : i32
    return %arg0, %c0_i32 : i32, i32
  }
  func.func @transform_1(%arg0: i32) -> (i32, i32) {
    %c0_i32 = arith.constant 0 : i32
    %c0_i32_0 = arith.constant 0 : i32
    %c0_i32_1 = arith.constant 0 : i32
    return %c0_i32, %c0_i32_0 : i32, i32
  }
  func.func @transform_2(%arg0: i32) -> (i32, i32) {
    %c0_i32 = arith.constant 0 : i32
    %c0_i32_0 = arith.constant 0 : i32
    %c0_i32_1 = arith.constant 0 : i32
    return %c0_i32, %c0_i32_0 : i32, i32
  }
  func.func @transform_3(%arg0: i32) -> (i32, i32) {
    %c0_i32 = arith.constant 0 : i32
    %c0_i32_0 = arith.constant 0 : i32
    %c0_i32_1 = arith.constant 0 : i32
    return %c0_i32, %c0_i32_0 : i32, i32
  }
  func.func @transform_4(%arg0: i32) -> (i32, i32) {
    %c0_i32 = arith.constant 0 : i32
    %c0_i32_0 = arith.constant 0 : i32
    %c0_i32_1 = arith.constant 0 : i32
    return %c0_i32, %c0_i32_0 : i32, i32
  }
  func.func @transform_5(%arg0: i32) -> (i32, i32) {
    %c0_i32 = arith.constant 0 : i32
    %c0_i32_0 = arith.constant 0 : i32
    return %arg0, %c0_i32 : i32, i32
  }
}

</mosaic_0001>

<bundles_post_ra>
// kernel: projection_forward.1
= control target key start
LH: loop header
LB: loop body
LE: loop exit
PB: predicated region body
PF: predicated region fallthrough
CT: control target
= control target key end

     0   :  { %10 = vsyncpa [#allocation3], 0  ;;  %s1333_s0 = inlined_call_operand.vmem [shape: f32[16,256], index: 0, kind: input, shape index: {}]   ;;  %s1334_s1 = inlined_call_operand.vmem [shape: bf16[256,256], index: 1, kind: input, shape index: {}]   ;;  %s1335_s2 = inlined_call_operand.vmem [shape: f32[1,256], index: 2, kind: input, shape index: {}]   ;;  %s1336_s3 = inlined_call_operand.hbm [shape: bf16[256,128], index: 3, kind: input, shape index: {}]   ;;  %s1337_s4 = inlined_call_operand.vmem [shape: f32[1,128], index: 4, kind: input, shape index: {}]   ;;  %s1338_s5 = inlined_call_operand.hbm [shape: f32[16,128], index: 5, kind: output, shape index: {}]  }
   0x1   :  { %11 = vsyncpa [#allocation4], 0 }
   0x2   :  { %13 = vsyncpa [#allocation4 + $0x1], 0  ;;  %s1092_s18 = smov 0   ;;  %s1094_s19 = smov 0  }
   0x3   :  { %s1096_s20 = smov 0   ;;  %s1098_s21 = smov 0  }
   0x4 LB: > { %s1113_s22 = sadd.s32 4294967295, %s1056_s21   ;;  %s759_s23 = sadd.s32 4294967294, %s1056_s21   ;;  %s1056_s21 = sphi %s1098_s21, %s1354_s21   ;;  %s1052_s20 = sphi %s1096_s20, %s1353_s20   ;;  %s1048_s19 = sphi %s1094_s19, %s1352_s19   ;;  %s1044_s18 = sphi %s1092_s18, %s1351_s18  }
   0x5   : > { %s1117_s24 = sadd.s32 1, %s1056_s21   ;;  %s136_s25 = sadd.s32 1, %s1052_s20 }
   0x6   : > { %s133_s26 = ssub.s32 %s1056_s21, %s1117_s24  ;;  %p146_p0 = scmp.ne.s32.totalorder %s1052_s20, %s1048_s19 }
   0x7   : > { %p134_p1 = scmp.eq.s32.totalorder %s133_s26, 0  ;;  %p147_p2 = scmp.eq.s32.totalorder %s1113_s22, 1 }
   0x8   : > { %p152_p3 = scmp.ne.s32.totalorder %s1048_s19, %s1044_s18  ;;  %p153_p4 = scmp.eq.s32.totalorder %s759_s23, 1 }
   0x9   : > { %s1128_s27 = scalar_select %p134_p1, %s1052_s20, %s136_s25  }
   0xa   : > { %p1130_p5 = por %p147_p2, %p146_p0  ;;  %p1134_p6 = por %p153_p4, %p152_p3 }
   0xb   : > { %p760_p7 = scmp.ge.s32.totalorder %s1056_s21, 1  ;;  %p160_p8 = scmp.lt.s32.totalorder %s1056_s21, 3 }
   0xc   : > { %s1342_s28 = scalar_select %p1130_p5, 1, 0 }
   0xd   : > { %s1343_s29 = scalar_select %p1134_p6, 1, 0 }
   0xe   : > { %p1339_p9 = scmp.eq.s32.totalorder %s1113_s22, 0  ;;  %p1141_p10 = pnand %p760_p7, %p160_p8 }
   0xf   : > { %s1058_s6 = smov [#allocation2]   ;;  %s962_s11 = scalar_lea.hbm %s1336_s3, 2048 }
  0x10   : > { %s1344_s30 = scalar_select %p1141_p10, 1, 0 }
  0x11   : > { %s178_s7 = sshll.u32 %s1058_s6, 4  ;;  %p850_p11 = pneg %p1141_p10  ;;  %s179_s7 = int_to_ptr.vmem [resolvable:$true] %s178_s7 }
  0x12   : > { %p963_p13 = scmp.ne.s32.totalorder %s1336_s3, %s962_s11  ;;  %p969_p3 = scmp.lt.u32.totalorder %s962_s11, %s1336_s3 }
  0x13   : > { %p1149_p12 = pnand %p1339_p9, %p850_p11 }
  0x15   : > { %p964_p0 = pneg %p1149_p12 }
  0x17   : > { %p965_p1 = pnand %p964_p0, %p963_p13 }
  0x19   : > { %p966_p2 = pneg %p965_p1 }
  0x1b   : > { %p971_p4 = pnand %p969_p3, %p966_p2 }
  0x1d   : > { %974 = shalt.err (!%p971_p4)
}
  0x1e   : > { %s975_s16 = scalar_lea.vmem %s179_s7, 2048  ;;  %p983_p9 = scmp.lt.s32.totalorder %s179_s7, %s179_s7 }
  0x1f   : > { %p976_p7 = scmp.ne.s32.totalorder %s179_s7, %s975_s16  ;;  %p984_p6 = scmp.lt.s32.totalorder %s975_s16, %s975_s16 }
  0x21   : > { %p978_p8 = pnand %p976_p7, %p964_p0  ;;  %p985_p5 = por %p984_p6, %p983_p9 }
  0x23   : > { %p979_p11 = pneg %p978_p8 }
  0x25   : > { %p986_p10 = pnand %p985_p5, %p979_p11 }
  0x27   : > { %989 = shalt.err (!%p986_p10)
}
  0x28   : > { %s1059_s17 = smov 64   ;;  %s1060_s23 = smov 4  }
  0x29   : > { %853 = dma.hbm_to_vmem [thread:$0]  (!%p1149_p12), %s1336_s3, 2048, %s179_s7, [#allocation3], %s1059_s17, %s1059_s17, %s1060_s23  }
  0x2a   : > { %p1346_p13 = scmp.ne.s32.totalorder %s1344_s30, 0 }
  0x2b   : > { %p1347_p1 = scmp.eq.s32.totalorder (!%p1346_p13), %s1113_s22, 0 }
  0x2c   : > { %205 = sbr.rel (%p1346_p13) target bundleno = 727 (0x2d7), region = 40 }
  0x33   : > { %1035 = dma.done.wait (%p1347_p1), [#allocation3], 2048   ;;  %p1348_p0 = pmov %p1347_p1 }
  0x34   : > { %v896_v0 = vld [vmem:[%s1334_s1 + $0x4] ss:$8 sps:$4 sm:$0xff]   ;;  %v898_v1 = vld [vmem:[%s1334_s1] ss:$8 sps:$4 sm:$0xff]   ;;  %v899_v2 = vld [vmem:[%s1334_s1 + $0x14] ss:$8 sps:$4 sm:$0xff]   ;;  %v277_v52 = vlaneseq }
  0x35   : > { %1037 = vsyncadd (%p1348_p0), [#allocation3], 4294965248  ;;  %447 = vmatprep.subr.bf16.mxu0 %v896_v0  ;;  %v901_v3 = vld [vmem:[%s1334_s1 + $0x10] ss:$8 sps:$4 sm:$0xff]   ;;  %v902_v4 = vld [vmem:[%s1334_s1 + $0x24] ss:$8 sps:$4 sm:$0xff]  }
  0x36   : > { %448 = vmatpush1.bf16.msra.mxu0 %v898_v1  ;;  %v904_v5 = vld [vmem:[%s1334_s1 + $0x20] ss:$8 sps:$4 sm:$0xff]   ;;  %p233_p5 = scmp.lt.s32.totalorder %s1113_s22, 1  ;;  %v905_v6 = vld [vmem:[%s1334_s1 + $0x34] ss:$8 sps:$4 sm:$0xff]   ;;  %v278_v53 = vshrl.u32 %v277_v52, 7 }
  0x37   : > { %449 = vmatprep.subr.bf16.mxu0 %v899_v2  ;;  %v907_v7 = vld [vmem:[%s1334_s1 + $0x30] ss:$8 sps:$4 sm:$0xff]   ;;  %v908_v8 = vld [vmem:[%s1334_s1 + $0x44] ss:$8 sps:$4 sm:$0xff]   ;;  %v910_v9 = vld [vmem:[%s1334_s1 + $0x40] ss:$8 sps:$4 sm:$0xff]  }
  0x38   : > { %s234_s6 = scalar_select %p233_p5, %s1113_s22, 1  ;;  %v911_v10 = vld [vmem:[%s1334_s1 + $0x54] ss:$8 sps:$4 sm:$0xff]   ;;  %v913_v11 = vld [vmem:[%s1334_s1 + $0x50] ss:$8 sps:$4 sm:$0xff]   ;;  %v944_v17 = vld [vmem:[#allocation2 + $0x40] sm:$0xff]  }
  0x39   : > { %v914_v12 = vld [vmem:[%s1334_s1 + $0x64] ss:$8 sps:$4 sm:$0xff]   ;;  %v916_v13 = vld [vmem:[%s1334_s1 + $0x60] ss:$8 sps:$4 sm:$0xff]   ;;  %v917_v15 = vld [vmem:[%s1334_s1 + $0x74] ss:$8 sps:$4 sm:$0xff]   ;;  %822 = vmatprep.subr.bf16.mxu1 %v944_v17 }
  0x3a   : > { %450 = vmatpush1.bf16.msra.mxu0 %v901_v3  ;;  %s821_s30 = sshll.u32 %s234_s6, 4  ;;  %v945_v18 = vld [vmem:[#allocation2] sm:$0xff]   ;;  %v946_v19 = vld [vmem:[#allocation2 + $0x48] sm:$0xff]   ;;  %v919_v20 = vld [vmem:[%s1334_s1 + $0x70] ss:$8 sps:$4 sm:$0xff]   ;;  %v279_v54 = vsub.s32 0, %v278_v53 }
  0x3b   : > { %451 = vmatprep.subr.bf16.mxu0 %v902_v4  ;;  %s1213_s15 = scalar_lea.vmem %s1333_s0, %s821_s30  ;;  %823 = vmatpush3.bf16.msra.mxu1 %v945_v18  ;;  %v947_v21 = vld [vmem:[#allocation2 + $0x8] sm:$0xff]   ;;  %v948_v22 = vld [vmem:[#allocation2 + $0x50] sm:$0xff]   ;;  %v950_v26 = vld [vmem:[#allocation2 + $0x58] sm:$0xff]   ;;  %v283_v56 = vsub.s32 1, %v278_v53  ;;  %s230_s16 = sand.u32 1, %s1048_s19  }
  0x3c   : > { %v240_v14 = vld [vmem:[%s1213_s15 + $0x8] sm:$0xff]  ;;  %824 = vmatprep.subr.bf16.mxu1 %v946_v19  ;;  %v949_v25 = vld [vmem:[#allocation2 + $0x10] sm:$0xff]   ;;  %v951_v29 = vld [vmem:[#allocation2 + $0x18] sm:$0xff]   ;;  %s765_s17 = sshll.u32 %s230_s16, 3  ;;  %s818_s23 = sshll.u32 %s1113_s22, 7 }
  0x3d   : > { %v242_v16 = vpack.c.bf16 %v240_v14, %v240_v14  ;;  %v920_v23 = vld [vmem:[%s1334_s1 + $0x84] ss:$8 sps:$4 sm:$0xff]   ;;  %v922_v24 = vld [vmem:[%s1334_s1 + $0x80] ss:$8 sps:$4 sm:$0xff]   ;;  %v923_v27 = vld [vmem:[%s1334_s1 + $0x94] ss:$8 sps:$4 sm:$0xff]   ;;  %s1291_s8 = scalar_lea.hbm %s1338_s5, %s818_s23 }
  0x3e   : > { %452 = vmatpush1.bf16.msra.mxu0 %v904_v5  ;;  %v925_v28 = vld [vmem:[%s1334_s1 + $0x90] ss:$8 sps:$4 sm:$0xff]   ;;  %v926_v30 = vld [vmem:[%s1334_s1 + $0xa4] ss:$8 sps:$4 sm:$0xff]   ;;  %v928_v33 = vld [vmem:[%s1334_s1 + $0xa0] ss:$8 sps:$4 sm:$0xff]  }
  0x3f   : > { %453 = vmatprep.subr.bf16.mxu0 %v905_v6  ;;  %479 = vmatprep.mubr.bf16.mxu0 %v242_v16  ;;  %v952_v31 = vld [vmem:[#allocation2 + $0x60] sm:$0xff]   ;;  %v954_v34 = vld [vmem:[#allocation2 + $0x68] sm:$0xff]   ;;  %v929_v35 = vld [vmem:[%s1334_s1 + $0xb4] ss:$8 sps:$4 sm:$0xff]   ;;  %s232_s25 = scalar_lea.vmem [#allocation5], %s765_s17  ;;  %s675_s10 = scalar_lea.sflag [#allocation4], %s230_s16 }
  0x40   : > { %825 = vmatpush3.bf16.msra.mxu1 %v947_v21  ;;  %v953_v32 = vld [vmem:[#allocation2 + $0x20] sm:$0xff]   ;;  %v955_v36 = vld [vmem:[#allocation2 + $0x28] sm:$0xff]   ;;  %v931_v37 = vld [vmem:[%s1334_s1 + $0xb0] ss:$8 sps:$4 sm:$0xff]   ;;  %s688_s26 = sshll.u32 %s232_s25, 4  ;;  %p1349_p9 = scmp.ne.s32.totalorder %s1342_s28, 0  ;;  %s1293_s26 = int_to_ptr.vmem [resolvable:$true] %s688_s26 }
  0x41   : > { %826 = vmatprep.subr.bf16.mxu1 %v948_v22  ;;  %v932_v38 = vld [vmem:[%s1334_s1 + $0xc4] ss:$8 sps:$4 sm:$0xff]   ;;  %v934_v39 = vld [vmem:[%s1334_s1 + $0xc0] ss:$8 sps:$4 sm:$0xff]   ;;  %v935_v40 = vld [vmem:[%s1334_s1 + $0xd4] ss:$8 sps:$4 sm:$0xff]  }
  0x42   : > { %454 = vmatpush1.bf16.msra.mxu0 %v907_v7  ;;  %v937_v41 = vld [vmem:[%s1334_s1 + $0xd0] ss:$8 sps:$4 sm:$0xff]   ;;  %v938_v42 = vld [vmem:[%s1334_s1 + $0xe4] ss:$8 sps:$4 sm:$0xff]   ;;  %v940_v43 = vld [vmem:[%s1334_s1 + $0xe0] ss:$8 sps:$4 sm:$0xff]  }
  0x43   : > { %455 = vmatprep.subr.bf16.mxu0 %v908_v8  ;;  %v941_v44 = vld [vmem:[%s1334_s1 + $0xf4] ss:$8 sps:$4 sm:$0xff]   ;;  %v943_v45 = vld [vmem:[%s1334_s1 + $0xf0] ss:$8 sps:$4 sm:$0xff]   ;;  %v239_v46 = vld [vmem:[%s1213_s15] sm:$0xff]  ;;  %s990_s7 = scalar_lea.vmem %s1293_s26, 128 }
  0x44   : > { %827 = vmatpush3.bf16.msra.mxu1 %v949_v25  ;;  %v241_v47 = vpack.c.bf16 %v239_v46, %v239_v46  ;;  %v956_v48 = vld [vmem:[#allocation2 + $0x70] sm:$0xff]   ;;  %v958_v50 = vld [vmem:[#allocation2 + $0x78] sm:$0xff]   ;;  %v275_v55 = vld [vmem:[%s1335_s2] sm:$0x3]  ;;  %p991_p6 = scmp.ne.s32.totalorder %s1293_s26, %s990_s7  ;;  %s1061_s22 = smov [#allocation5]  }
  0x45   : > { %828 = vmatprep.subr.bf16.mxu1 %v950_v26  ;;  %v957_v49 = vld [vmem:[#allocation2 + $0x30] sm:$0xff]   ;;  %v959_v51 = vld [vmem:[#allocation2 + $0x38] sm:$0xff]   ;;  %v280_v57 = vrot.slane %v275_v55, %v279_v54  ;;  %v284_v58 = vrot.slane %v275_v55, %v283_v56  ;;  %v800_v7 = vld [vmem:[%s1337_s4] ss:$0 sm:$0xff]  ;;  %s994_s30 = sshll.u32 %s1061_s22, 4  ;;  %s995_s30 = int_to_ptr.vmem [resolvable:$false] %s994_s30 }
  0x46   : > { %456 = vmatpush1.bf16.msra.mxu0 %v910_v9  ;;  %p992_p10 = pnand %p991_p6, %p1349_p9  ;;  %s996_s11 = scalar_lea.vmem %s995_s30, 256 }
  0x47   : > { %457 = vmatprep.subr.bf16.mxu0 %v911_v10  ;;  %p997_p2 = scmp.lt.s32.totalorder %s1293_s26, %s995_s30  ;;  %p998_p3 = scmp.lt.s32.totalorder %s996_s11, %s990_s7 }
  0x48   : > { %829 = vmatpush3.bf16.msra.mxu1 %v951_v29  ;;  %p993_p12 = pneg %p992_p10 }
  0x49   : > { %830 = vmatprep.subr.bf16.mxu1 %v952_v31  ;;  %p999_p4 = por %p998_p3, %p997_p2 }
  0x4a   : > { %458 = vmatpush1.bf16.msra.mxu0 %v913_v11 }
  0x4b   : > { %459 = vmatprep.subr.bf16.mxu0 %v914_v12  ;;  %p1000_p7 = pnand %p999_p4, %p993_p12 }
  0x4c   : > { %831 = vmatpush3.bf16.msra.mxu1 %v953_v32 }
  0x4d   : > { %832 = vmatprep.subr.bf16.mxu1 %v954_v34 }
  0x4e   : > { %460 = vmatpush1.bf16.msra.mxu0 %v916_v13 }
  0x4f   : > { %461 = vmatprep.subr.bf16.mxu0 %v917_v15 }
  0x50   : > { %833 = vmatpush3.bf16.msra.mxu1 %v955_v36 }
  0x51   : > { %834 = vmatprep.subr.bf16.mxu1 %v956_v48 }
  0x52   : > { %462 = vmatpush1.bf16.msra.mxu0 %v919_v20 }
  0x53   : > { %463 = vmatprep.subr.bf16.mxu0 %v920_v23 }
  0x54   : > { %835 = vmatpush3.bf16.msra.mxu1 %v957_v49 }
  0x55   : > { %836 = vmatprep.subr.bf16.mxu1 %v958_v50 }
  0x56   : > { %464 = vmatpush1.bf16.msra.mxu0 %v922_v24 }
  0x57   : > { %465 = vmatprep.subr.bf16.mxu0 %v923_v27 }
  0x58   : > { %837 = vmatpush3.bf16.msra.mxu1 %v959_v51 }
  0x5a   : > { %466 = vmatpush1.bf16.msra.mxu0 %v925_v28 }
  0x5b   : > { %467 = vmatprep.subr.bf16.mxu0 %v926_v30 }
  0x5e   : > { %468 = vmatpush1.bf16.msra.mxu0 %v928_v33 }
  0x5f   : > { %469 = vmatprep.subr.bf16.mxu0 %v929_v35 }
  0x62   : > { %470 = vmatpush1.bf16.msra.mxu0 %v931_v37 }
  0x63   : > { %471 = vmatprep.subr.bf16.mxu0 %v932_v38 }
  0x66   : > { %472 = vmatpush1.bf16.msra.mxu0 %v934_v39 }
  0x67   : > { %473 = vmatprep.subr.bf16.mxu0 %v935_v40 }
  0x6a   : > { %474 = vmatpush1.bf16.msra.mxu0 %v937_v41 }
  0x6b   : > { %475 = vmatprep.subr.bf16.mxu0 %v938_v42 }
  0x6e   : > { %476 = vmatpush1.bf16.msra.mxu0 %v940_v43 }
  0x6f   : > { %477 = vmatprep.subr.bf16.mxu0 %v941_v44 }
  0x72   : > { %478 = vmatpush1.bf16.msra.mxu0 %v943_v45 }
  0x75   : > { %480 = vmatmul.mubr.bf16.vlgmr.msra.gmra.mrb[0].mxu0 %v241_v47 }
 0x148   : > { %v481_v59 = vpop.f32.mrb[0].mxu0 }
 0x149   : > { %v482_v60 = vadd.f32 %v481_v59, %v280_v57  ;;  %v483_v61 = vpop.f32.mrb[1].mxu0 }
 0x14a   : > { %v484_v62 = vadd.f32 %v483_v61, %v284_v58  ;;  %v485_v63 = vpop.f32.mrb[2].mxu0 }
 0x14b   : > { %v488_v0 = vmax.f32 %v482_v60, 0.0  ;;  %v486_v1 = vpop.f32.mrb[3].mxu0 }
 0x14c   : > { %v489_v2 = vmax.f32 %v484_v62, 0.0 }
 0x14d   : > { %v490_v4 = vpack.c.bf16 %v488_v0, %v488_v0 }
 0x14e   : > { %v491_v3 = vpack.c.bf16 %v489_v2, %v489_v2 }
 0x150   : > { %659 = vmatprep.mubr.bf16.mxu1 %v491_v3 }
 0x151   : > { %660 = vmatmul.mubr.bf16.vlgmr.msra.gmra.mrb[0].mxu1 %v490_v4 }
 0x224   : > { %v838_v5 = vpop.f32.mrb[0].mxu1 }
 0x225   : > { %v839_v6 = vpop.f32.mrb[1].mxu1 }
 0x226   : > { %v840_v8 = vadd.f32 %v839_v6, %v838_v5  ;;  %v841_v9 = vpop.f32.mrb[2].mxu1 }
 0x227   : > { %v842_v10 = vpop.f32.mrb[3].mxu1 }
 0x228   : > { %v662_v11 = vadd.f32 %v840_v8, %v800_v7 }
 0x22a   : > { %v667_v12 = vmul.f32 %v662_v11, %v662_v11 }
 0x22c   : > { %668 = vadd.xlane.f32.xlu0 %v667_v12 }
 0x2b9   : > { %v669_v13 = vpop.xlane.xlu0 %668 }
 0x2ba   : > { %v670_v14 = vmax.f32 %v669_v13, 1e-24 }
 0x2bc   : > { %960 = vrsqrt.f32 %v670_v14 }
 0x2c6   : > { %v961_v15 = vpop.eup %960 }
 0x2c7   : > { %v672_v16 = vmul.f32 %v961_v15, %v662_v11 }
 0x2c9   : > { %673 = vst [vmem:[%s232_s25] sm:$0xff] %v672_v16 }
 0x2ca   : > { %1003 = shalt.err (!%p1000_p7)
}
 0x2cb   : > { %s1004_s12 = scalar_lea.hbm %s1291_s8, 128  ;;  %s1008_s14 = scalar_lea.hbm %s1338_s5, 256 }
 0x2cc   : > { %p1005_p8 = scmp.ne.s32.totalorder %s1291_s8, %s1004_s12  ;;  %p1009_p1 = scmp.lt.u32.totalorder %s1291_s8, %s1338_s5 }
 0x2cd   : > { %p1010_p0 = scmp.lt.u32.totalorder %s1008_s14, %s1004_s12  ;;  %p1012_p6 = scmp.lt.u32.totalorder %s1004_s12, %s1291_s8 }
 0x2ce   : > { %p1006_p11 = pnand %p1005_p8, %p1349_p9 }
 0x2cf   : > { %p1011_p5 = por %p1010_p0, %p1009_p1 }
 0x2d0   : > { %p1007_p13 = pneg %p1006_p11 }
 0x2d1   : > { %p1013_p10 = por %p1012_p6, %p1011_p5 }
 0x2d3   : > { %p1014_p12 = pnand %p1013_p10, %p1007_p13 }
 0x2d5   : > { %1017 = shalt.err (!%p1014_p12)
}
 0x2d6   : > { %848 = dma.vmem_to_hbm [thread:$0]  (%p1349_p9), %s1293_s26, 128, %s1291_s8, %s675_s10  }
 0x2d7 PF: > { %p860_p2 = scmp.ge.s32.totalorder %s1056_s21, 2  ;;  %s700_s23 = sand.u32 1, %s1044_s18  }
 0x2d8   : > { %p1350_p3 = scmp.ne.s32.totalorder %s1343_s29, 0  ;;  %s701_s25 = scalar_lea.sflag [#allocation4], %s700_s23 }
 0x2da   : > { %p855_p4 = pnand %p860_p2, %p1350_p3 }
 0x2dc   : > { %1039 = dma.done.wait (!%p855_p4), %s701_s25, 128  }
 0x2dd   : > { %1041 = vsyncadd (!%p855_p4), %s701_s25, 4294967168  ;;  %p16_p7 = scmp.ge.s32.totalorder %s1117_s24, 4   ;;  %s1351_s18 = smov %s1048_s19 }
 0x2de   : > { %s1352_s19 = smov %s1052_s20  ;;  %s1353_s20 = smov %s1128_s27 }
 0x2df   : > { %s1354_s21 = smov %s1117_s24  ;;  %18 = sbr.rel (!%p16_p7) target bundleno = 4 (0x4), region = 80 }
 0x2e6   :  { %706 = vsyncpa [#allocation3], 1 }
 0x2e7   :  { %708 = vsyncpa [#allocation3 + $0x1], 1 }
 0x2e8   :  { %709 = vsyncpa [#allocation4], 1 }
 0x2e9   :  { %711 = vsyncpa [#allocation4 + $0x1], 1 }

</bundles_post_ra>
